<compile_context>
chip_gen: v7x
topology: tpu7x:2x2x1
jax: 0.10.0
libtpu: 0.0.40
codegen_flags: <defaults>
</compile_context>

<pallas_src>
from functools import partial

import jax
import jax.numpy as jnp
from jax import lax
from jax.experimental import pallas as pl
from jax.experimental.pallas import tpu as pltpu


# ----------------------------- fused Pallas kernel -------------------------

def _bottleneck_kernel(x_ref, w1_ref, b1_ref, w2s_ref, b2s_ref, mask_ref,
                       w2t_ref, b2t_ref, w3_ref, b3_ref,
                       o_ref, y1_s, y2_s, st_s, st_t, *, H, W, compute_dtype):
    """One batch element of the Bottleneck, entirely in VMEM.

    Layouts (channels on sublanes, flattened T*H*W positions on lanes):
      x_ref : (Cin,  S)           f32, also the residual
      o_ref : (Cout, S)           f32, lane-dense store
      y1_s  : (planes, (T+2)*H*W) bf16 scratch, temporal halo frames kept at 0
      y2_s  : (mid,    (T+2)*H*W) bf16 scratch, temporal halo frames kept at 0
      st_s  : (9*planes, S)       bf16 staging: 9 shifted+masked spatial taps
      st_t  : (3*mid,   S)        bf16 staging: 3 shifted temporal taps
    """
    f32 = jnp.float32
    S = x_ref.shape[-1]                    # T*H*W
    HW = H * W
    planes = w1_ref.shape[0]
    mid = w2s_ref.shape[0]

    x = x_ref[...]                         # (Cin, S) f32 - read once, reuse as residual

    # Zero the temporal halo frames (temporal zero padding + slice guard).
    zero_p = jnp.zeros((planes, HW), compute_dtype)
    zero_m = jnp.zeros((mid, HW), compute_dtype)
    y1_s[:, :HW] = zero_p
    y1_s[:, HW + S:HW + S + HW] = zero_p
    y2_s[:, :HW] = zero_m
    y2_s[:, HW + S:HW + S + HW] = zero_m

    # ---- conv1 (1x1x1) + bn1 + relu ---------------------------------------
    y1 = jnp.dot(w1_ref[...], x.astype(compute_dtype),
                 preferred_element_type=f32)
    y1 = jnp.maximum(y1 + b1_ref[...], 0.0)
    y1_s[:, HW:HW + S] = y1.astype(compute_dtype)

    # ---- conv2_s (1,3,3), pad (0,1,1) + bn2_s + relu -----------------------
    # Stage the 9 shifted+masked tap slices, then ONE matmul with K = 9*planes.
    for kh in range(3):
        for kw in range(3):
            k = kh * 3 + kw
            off = (kh - 1) * W + (kw - 1)
            sl = y1_s[:, HW + off:HW + off + S]          # (planes, S) bf16
            if (kh, kw) != (1, 1):                       # centre tap: mask == 1
                sl = sl * mask_ref[k:k + 1, :]           # spatial zero padding
            st_s[k * planes:(k + 1) * planes, :] = sl
    y2 = jnp.dot(w2s_ref[...], st_s[...], preferred_element_type=f32)
    y2 = jnp.maximum(y2 + b2s_ref[...], 0.0)
    y2_s[:, HW:HW + S] = y2.astype(compute_dtype)

    # ---- conv2_t (3,1,1), pad (1,0,0) + bn2_t + relu -----------------------
    # Stage the 3 shifted temporal frames, then ONE matmul with K = 3*mid.
    for kt in range(3):
        off = (kt - 1) * HW
        st_t[kt * mid:(kt + 1) * mid, :] = y2_s[:, HW + off:HW + off + S]
    y3 = jnp.dot(w2t_ref[...], st_t[...], preferred_element_type=f32)
    y3 = jnp.maximum(y3 + b2t_ref[...], 0.0)

    # ---- conv3 (1x1x1) + bn3 + residual add + relu -------------------------
    out = jnp.dot(w3_ref[...], y3.astype(compute_dtype),
                  preferred_element_type=f32)
    out = jnp.maximum(out + b3_ref[...] + x, 0.0)
    o_ref[...] = out.astype(o_ref.dtype)


# ------------------------------- wrapper -----------------------------------

def _bn_fold(bn, eps):
    gamma, beta, mean, var = bn
    scale = gamma / jnp.sqrt(var + eps)
    return scale, beta - mean * scale


def bottleneck_forward_pallas(x, params, *, compute_dtype=jnp.bfloat16, eps=1e-5):
    """Fused Bottleneck forward (stride=1, identity shortcut). x: (N,C,T,H,W).

    On v5e (no bf16 VPU) pass compute_dtype=jnp.float32 to keep all elementwise
    work on the f32 path.
    """
    N, Cin, T, H, W = x.shape
    planes = params["w1"].shape[0]
    mid = params["w2s"].shape[0]
    cout = params["w3"].shape[0]
    # TODO(synk): downsample / stride>1 shortcut branch not implemented
    # (module configuration here is downsample=None, stride=1).
    assert Cin == cout, "identity residual requires in_planes == planes*expansion"

    S = T * H * W
    HW = H * W
    f32 = jnp.float32
    csize = jnp.dtype(compute_dtype).itemsize

    # ---- fold inference BatchNorm scale into the weights -------------------
    s1, b1 = _bn_fold(params["bn1"], eps)
    w1 = (params["w1"].reshape(planes, Cin) * s1[:, None]).astype(compute_dtype)

    s2s, b2s = _bn_fold(params["bn2_s"], eps)
    w2s = params["w2s"][:, :, 0] * s2s[:, None, None, None]     # (mid, planes, 3, 3)
    w2s = jnp.transpose(w2s, (0, 2, 3, 1)).reshape(mid, 9 * planes).astype(compute_dtype)

    s2t, b2t = _bn_fold(params["bn2_t"], eps)
    w2t = params["w2t"][:, :, :, 0, 0] * s2t[:, None, None]     # (planes, mid, 3)
    w2t = jnp.transpose(w2t, (0, 2, 1)).reshape(planes, 3 * mid).astype(compute_dtype)

    s3, b3 = _bn_fold(params["bn3"], eps)
    w3 = (params["w3"].reshape(cout, planes) * s3[:, None]).astype(compute_dtype)

    b1 = b1.reshape(planes, 1).astype(f32)
    b2s = b2s.reshape(mid, 1).astype(f32)
    b2t = b2t.reshape(planes, 1).astype(f32)
    b3 = b3.reshape(cout, 1).astype(f32)

    # ---- per-tap spatial zero-padding masks (9, S): 1 = neighbour in frame --
    idx = jnp.arange(S)
    h = (idx % HW) // W
    w = idx % W
    masks = []
    for kh in range(3):
        for kw in range(3):
            hh = h + (kh - 1)
            ww = w + (kw - 1)
            masks.append((hh >= 0) & (hh < H) & (ww >= 0) & (ww < W))
    masks = jnp.stack(masks).astype(compute_dtype)               # (9, S), exact 0/1

    # If the surrounding network is bf16, x / out can be bf16 too (halves the
    # kernel's only HBM traffic); kept f32 here to match the f32 reference.
    x_flat = x.reshape(N, Cin, S).astype(f32)                    # free reshape

    # ---- explicit scoped-VMEM budget: actual block + scratch footprint ------
    block_bytes = (Cin * S + cout * S) * 4                       # x + out (f32), per buffer
    const_bytes = ((planes * Cin + mid * 9 * planes + planes * 3 * mid
                    + cout * planes + 9 * S) * csize
                   + (planes + mid + planes + cout) * 4)
    scratch_bytes = ((planes + mid) * (T + 2) * HW
                     + 9 * planes * S + 3 * mid * S) * csize
    vmem_limit = int(2 * (block_bytes + const_bytes) + scratch_bytes) * 2 \
        + (8 << 20)                                              # 2x buffering + headroom

    kernel = partial(_bottleneck_kernel, H=H, W=W, compute_dtype=compute_dtype)
    out = pl.pallas_call(
        kernel,
        out_shape=jax.ShapeDtypeStruct((N, cout, S), f32),
        grid_spec=pltpu.PrefetchScalarGridSpec(
            num_scalar_prefetch=0,
            grid=(N,),                                  # one batch element / step
            in_specs=[
                pl.BlockSpec((None, Cin, S), lambda n: (n, 0, 0)),     # x
                pl.BlockSpec((planes, Cin), lambda n: (0, 0)),         # w1 (BN-scaled)
                pl.BlockSpec((planes, 1), lambda n: (0, 0)),           # b1
                pl.BlockSpec((mid, 9 * planes), lambda n: (0, 0)),     # w2s taps
                pl.BlockSpec((mid, 1), lambda n: (0, 0)),              # b2s
                pl.BlockSpec((9, S), lambda n: (0, 0)),                # pad masks
                pl.BlockSpec((planes, 3 * mid), lambda n: (0, 0)),     # w2t taps
                pl.BlockSpec((planes, 1), lambda n: (0, 0)),           # b2t
                pl.BlockSpec((cout, planes), lambda n: (0, 0)),        # w3 (BN-scaled)
                pl.BlockSpec((cout, 1), lambda n: (0, 0)),             # b3
            ],
            out_specs=pl.BlockSpec((None, cout, S), lambda n: (n, 0, 0)),
            scratch_shapes=[
                pltpu.VMEM((planes, (T + 2) * HW), compute_dtype),   # y1 (temporal halo)
                pltpu.VMEM((mid, (T + 2) * HW), compute_dtype),      # y2 (temporal halo)
                pltpu.VMEM((9 * planes, S), compute_dtype),          # conv2_s staging
                pltpu.VMEM((3 * mid, S), compute_dtype),             # conv2_t staging
            ],
        ),
        compiler_params=pltpu.CompilerParams(
            dimension_semantics=("parallel",),           # megacore on v7x
            vmem_limit_bytes=vmem_limit),
    )(x_flat, w1, b1, w2s, b2s, masks, w2t, b2t, w3, b3)

    return out.reshape(N, cout, T, H, W)                 # free reshape


# ------------------------- pure-JAX reference ------------------------------

def bottleneck_forward_ref(x, params, eps=1e-5):
    def conv(y, w, stride, padding):
        return lax.conv_general_dilated(
            y, w, window_strides=stride, padding=padding,
            dimension_numbers=("NCDHW", "OIDHW", "NCDHW"))

    def bn(y, p):
        g, b, m, v = p
        sh = (1, -1, 1, 1, 1)
        return (y - m.reshape(sh)) / jnp.sqrt(v.reshape(sh) + eps) * g.reshape(sh) + b.reshape(sh)

    out = jax.nn.relu(bn(conv(x, params["w1"], (1, 1, 1), [(0, 0)] * 3), params["bn1"]))
    out = jax.nn.relu(bn(conv(out, params["w2s"], (1, 1, 1), [(0, 0), (1, 1), (1, 1)]), params["bn2_s"]))
    out = jax.nn.relu(bn(conv(out, params["w2t"], (1, 1, 1), [(1, 1), (0, 0), (0, 0)]), params["bn2_t"]))
    out = bn(conv(out, params["w3"], (1, 1, 1), [(0, 0)] * 3), params["bn3"])
    return jax.nn.relu(out + x)


# --------------------------------- main ------------------------------------

if __name__ == "__main__":
    key = jax.random.PRNGKey(0)

    # Identity-residual Bottleneck config => in_planes = planes * expansion.
    planes = 4
    in_planes = planes * 4                            # 16
    n_3d = planes * planes * 3 * 3 * 3
    n_2p1d = planes * 3 * 3 + 3 * planes
    mid_planes = n_3d // n_2p1d                       # 9

    N, T, H, W = 2, 4, 8, 8

    keys = jax.random.split(key, 12)

    def bn_params(k, c):
        k1, k2, k3, k4 = jax.random.split(k, 4)
        gamma = 1.0 + 0.1 * jax.random.normal(k1, (c,), jnp.float32)
        beta = 0.1 * jax.random.normal(k2, (c,), jnp.float32)
        mean = 0.1 * jax.random.normal(k3, (c,), jnp.float32)
        var = jax.random.uniform(k4, (c,), jnp.float32, 0.5, 1.5)
        return (gamma, beta, mean, var)

    params = {
        "w1":  0.1 * jax.random.normal(keys[0], (planes, in_planes, 1, 1, 1), jnp.float32),
        "bn1": bn_params(keys[1], planes),
        "w2s": 0.1 * jax.random.normal(keys[2], (mid_planes, planes, 1, 3, 3), jnp.float32),
        "bn2_s": bn_params(keys[3], mid_planes),
        "w2t": 0.1 * jax.random.normal(keys[4], (planes, mid_planes, 3, 1, 1), jnp.float32),
        "bn2_t": bn_params(keys[5], planes),
        "w3":  0.1 * jax.random.normal(keys[6], (planes * 4, planes, 1, 1, 1), jnp.float32),
        "bn3": bn_params(keys[7], planes * 4),
    }

    x = jax.random.normal(keys[8], (N, in_planes, T, H, W), jnp.float32)

    fwd = jax.jit(bottleneck_forward_pallas)
    out = jax.block_until_ready(fwd(x, params))

    ref = bottleneck_forward_ref(x, params)
    assert out.shape == ref.shape == (N, planes * 4, T, H, W)
    # bf16 MXU operands + bf16 intermediate activations (f32 accumulate / f32
    # epilogue) => slightly loosened tolerance.
    assert jnp.allclose(out, ref, atol=3e-2, rtol=3e-2), (
        f"mismatch vs reference: max abs err {jnp.max(jnp.abs(out - ref))}")

    print("KERNEL_OK")
</pallas_src>

<mosaic_0001>
module attributes {stable_mosaic.version = 11 : i64} {
  func.func @_bottleneck_kernel(%arg0: i32, %arg1: memref<1x16x256xf32, #tpu.memory_space<vmem>>, %arg2: memref<4x16xbf16, #tpu.memory_space<vmem>>, %arg3: memref<4x1xf32, #tpu.memory_space<vmem>>, %arg4: memref<9x36xbf16, #tpu.memory_space<vmem>>, %arg5: memref<9x1xf32, #tpu.memory_space<vmem>>, %arg6: memref<9x256xbf16, #tpu.memory_space<vmem>>, %arg7: memref<4x27xbf16, #tpu.memory_space<vmem>>, %arg8: memref<4x1xf32, #tpu.memory_space<vmem>>, %arg9: memref<16x4xbf16, #tpu.memory_space<vmem>>, %arg10: memref<16x1xf32, #tpu.memory_space<vmem>>, %arg11: memref<1x16x256xf32, #tpu.memory_space<vmem>>, %arg12: memref<4x384xbf16, #tpu.memory_space<vmem>>, %arg13: memref<9x384xbf16, #tpu.memory_space<vmem>>, %arg14: memref<36x256xbf16, #tpu.memory_space<vmem>>, %arg15: memref<27x256xbf16, #tpu.memory_space<vmem>>) attributes {dimension_semantics = [#tpu.dimension_semantics<parallel>], iteration_bounds = array<i64: 2>, scalar_prefetch = 0 : i64, scratch_operands = 4 : i64, tpu.core_type = #tpu.core_type<tc>, window_params = [{transform_indices = @transform_0, window_bounds = array<i64: 1, 16, 256>}, {pipeline_mode = #tpu.pipeline_mode<synchronous>, transform_indices = @transform_1, window_bounds = array<i64: 4, 16>}, {pipeline_mode = #tpu.pipeline_mode<synchronous>, transform_indices = @transform_2, window_bounds = array<i64: 4, 1>}, {pipeline_mode = #tpu.pipeline_mode<synchronous>, transform_indices = @transform_3, window_bounds = array<i64: 9, 36>}, {pipeline_mode = #tpu.pipeline_mode<synchronous>, transform_indices = @transform_4, window_bounds = array<i64: 9, 1>}, {pipeline_mode = #tpu.pipeline_mode<synchronous>, transform_indices = @transform_5, window_bounds = array<i64: 9, 256>}, {pipeline_mode = #tpu.pipeline_mode<synchronous>, transform_indices = @transform_6, window_bounds = array<i64: 4, 27>}, {pipeline_mode = #tpu.pipeline_mode<synchronous>, transform_indices = @transform_7, window_bounds = array<i64: 4, 1>}, {pipeline_mode = #tpu.pipeline_mode<synchronous>, transform_indices = @transform_8, window_bounds = array<i64: 16, 4>}, {pipeline_mode = #tpu.pipeline_mode<synchronous>, transform_indices = @transform_9, window_bounds = array<i64: 16, 1>}, {transform_indices = @transform_10, window_bounds = array<i64: 1, 16, 256>}]} {
    %c0 = arith.constant 0 : index
    %c0_0 = arith.constant 0 : index
    %c0_1 = arith.constant 0 : index
    %0 = vector.load %arg1[%c0, %c0_0, %c0_1] : memref<1x16x256xf32, #tpu.memory_space<vmem>>, vector<1x16x256xf32>
    %1 = vector.shape_cast %0 : vector<1x16x256xf32> to vector<16x256xf32>
    %cst = arith.constant 0.000000e+00 : bf16
    %2 = vector.broadcast %cst : bf16 to vector<4x64xbf16>
    %cst_2 = arith.constant 0.000000e+00 : bf16
    %3 = vector.broadcast %cst_2 : bf16 to vector<9x64xbf16>
    %c0_3 = arith.constant 0 : index
    %c0_4 = arith.constant 0 : index
    %4 = vector.load %arg12[%c0_3, %c0_4] : memref<4x384xbf16, #tpu.memory_space<vmem>>, vector<4x64xbf16>
    tpu.vector_store %arg12[%c0_3, %c0_4], %2 {strides = array<i32>} : memref<4x384xbf16, #tpu.memory_space<vmem>>, vector<4x64xbf16>,
    %c0_5 = arith.constant 0 : index
    %c320 = arith.constant 320 : index
    %5 = vector.load %arg12[%c0_5, %c320] : memref<4x384xbf16, #tpu.memory_space<vmem>>, vector<4x64xbf16>
    tpu.vector_store %arg12[%c0_5, %c320], %2 {strides = array<i32>} : memref<4x384xbf16, #tpu.memory_space<vmem>>, vector<4x64xbf16>,
    %c0_6 = arith.constant 0 : index
    %c0_7 = arith.constant 0 : index
    %6 = vector.load %arg13[%c0_6, %c0_7] : memref<9x384xbf16, #tpu.memory_space<vmem>>, vector<9x64xbf16>
    tpu.vector_store %arg13[%c0_6, %c0_7], %3 {strides = array<i32>} : memref<9x384xbf16, #tpu.memory_space<vmem>>, vector<9x64xbf16>,
    %c0_8 = arith.constant 0 : index
    %c320_9 = arith.constant 320 : index
    %7 = vector.load %arg13[%c0_8, %c320_9] : memref<9x384xbf16, #tpu.memory_space<vmem>>, vector<9x64xbf16>
    tpu.vector_store %arg13[%c0_8, %c320_9], %3 {strides = array<i32>} : memref<9x384xbf16, #tpu.memory_space<vmem>>, vector<9x64xbf16>,
    %c0_10 = arith.constant 0 : index
    %c0_11 = arith.constant 0 : index
    %8 = vector.load %arg2[%c0_10, %c0_11] : memref<4x16xbf16, #tpu.memory_space<vmem>>, vector<4x16xbf16>
    %9 = arith.truncf %1 : vector<16x256xf32> to vector<16x256xbf16>
    %cst_12 = arith.constant dense<0.000000e+00> : vector<4x256xf32>
    %10 = tpu.matmul %8, %9, %cst_12 {dimension_numbers = #tpu.dot_dimension_numbers<[1], [0], [0], [1], [0, 0, 1, 1], [], []>} : vector<4x16xbf16>, vector<16x256xbf16>, vector<4x256xf32> -> vector<4x256xf32>
    %c0_13 = arith.constant 0 : index
    %c0_14 = arith.constant 0 : index
    %11 = vector.load %arg3[%c0_13, %c0_14] : memref<4x1xf32, #tpu.memory_space<vmem>>, vector<4x1xf32>
    %12 = vector.broadcast %11 : vector<4x1xf32> to vector<4x256xf32>
    %13 = arith.addf %10, %12 : vector<4x256xf32>
    %cst_15 = arith.constant 0.000000e+00 : f32
    %14 = vector.broadcast %cst_15 : f32 to vector<4x256xf32>
    %15 = arith.maximumf %13, %14 : vector<4x256xf32>
    %16 = arith.truncf %15 : vector<4x256xf32> to vector<4x256xbf16>
    %c0_16 = arith.constant 0 : index
    %c64 = arith.constant 64 : index
    %17 = vector.load %arg12[%c0_16, %c64] : memref<4x384xbf16, #tpu.memory_space<vmem>>, vector<4x256xbf16>
    tpu.vector_store %arg12[%c0_16, %c64], %16 {strides = array<i32>} : memref<4x384xbf16, #tpu.memory_space<vmem>>, vector<4x256xbf16>,
    %c0_17 = arith.constant 0 : index
    %c55 = arith.constant 55 : index
    %18 = vector.load %arg12[%c0_17, %c55] : memref<4x384xbf16, #tpu.memory_space<vmem>>, vector<4x256xbf16>
    %c0_18 = arith.constant 0 : index
    %c0_19 = arith.constant 0 : index
    %19 = vector.load %arg6[%c0_18, %c0_19] : memref<9x256xbf16, #tpu.memory_space<vmem>>, vector<1x256xbf16>
    %20 = vector.broadcast %19 : vector<1x256xbf16> to vector<4x256xbf16>
    %21 = arith.mulf %18, %20 : vector<4x256xbf16>
    %c0_20 = arith.constant 0 : index
    %c0_21 = arith.constant 0 : index
    %22 = vector.load %arg14[%c0_20, %c0_21] : memref<36x256xbf16, #tpu.memory_space<vmem>>, vector<4x256xbf16>
    tpu.vector_store %arg14[%c0_20, %c0_21], %21 {strides = array<i32>} : memref<36x256xbf16, #tpu.memory_space<vmem>>, vector<4x256xbf16>,
    %c0_22 = arith.constant 0 : index
    %c56 = arith.constant 56 : index
    %23 = vector.load %arg12[%c0_22, %c56] : memref<4x384xbf16, #tpu.memory_space<vmem>>, vector<4x256xbf16>
    %c1 = arith.constant 1 : index
    %c0_23 = arith.constant 0 : index
    %24 = vector.load %arg6[%c1, %c0_23] : memref<9x256xbf16, #tpu.memory_space<vmem>>, vector<1x256xbf16>
    %25 = vector.broadcast %24 : vector<1x256xbf16> to vector<4x256xbf16>
    %26 = arith.mulf %23, %25 : vector<4x256xbf16>
    %c4 = arith.constant 4 : index
    %c0_24 = arith.constant 0 : index
    %27 = vector.load %arg14[%c4, %c0_24] : memref<36x256xbf16, #tpu.memory_space<vmem>>, vector<4x256xbf16>
    tpu.vector_store %arg14[%c4, %c0_24], %26 {strides = array<i32>} : memref<36x256xbf16, #tpu.memory_space<vmem>>, vector<4x256xbf16>,
    %c0_25 = arith.constant 0 : index
    %c57 = arith.constant 57 : index
    %28 = vector.load %arg12[%c0_25, %c57] : memref<4x384xbf16, #tpu.memory_space<vmem>>, vector<4x256xbf16>
    %c2 = arith.constant 2 : index
    %c0_26 = arith.constant 0 : index
    %29 = vector.load %arg6[%c2, %c0_26] : memref<9x256xbf16, #tpu.memory_space<vmem>>, vector<1x256xbf16>
    %30 = vector.broadcast %29 : vector<1x256xbf16> to vector<4x256xbf16>
    %31 = arith.mulf %28, %30 : vector<4x256xbf16>
    %c8 = arith.constant 8 : index
    %c0_27 = arith.constant 0 : index
    %32 = vector.load %arg14[%c8, %c0_27] : memref<36x256xbf16, #tpu.memory_space<vmem>>, vector<4x256xbf16>
    tpu.vector_store %arg14[%c8, %c0_27], %31 {strides = array<i32>} : memref<36x256xbf16, #tpu.memory_space<vmem>>, vector<4x256xbf16>,
    %c0_28 = arith.constant 0 : index
    %c63 = arith.constant 63 : index
    %33 = vector.load %arg12[%c0_28, %c63] : memref<4x384xbf16, #tpu.memory_space<vmem>>, vector<4x256xbf16>
    %c3 = arith.constant 3 : index
    %c0_29 = arith.constant 0 : index
    %34 = vector.load %arg6[%c3, %c0_29] : memref<9x256xbf16, #tpu.memory_space<vmem>>, vector<1x256xbf16>
    %35 = vector.broadcast %34 : vector<1x256xbf16> to vector<4x256xbf16>
    %36 = arith.mulf %33, %35 : vector<4x256xbf16>
    %c12 = arith.constant 12 : index
    %c0_30 = arith.constant 0 : index
    %37 = vector.load %arg14[%c12, %c0_30] : memref<36x256xbf16, #tpu.memory_space<vmem>>, vector<4x256xbf16>
    tpu.vector_store %arg14[%c12, %c0_30], %36 {strides = array<i32>} : memref<36x256xbf16, #tpu.memory_space<vmem>>, vector<4x256xbf16>,
    %c0_31 = arith.constant 0 : index
    %c64_32 = arith.constant 64 : index
    %38 = vector.load %arg12[%c0_31, %c64_32] : memref<4x384xbf16, #tpu.memory_space<vmem>>, vector<4x256xbf16>
    %c16 = arith.constant 16 : index
    %c0_33 = arith.constant 0 : index
    %39 = vector.load %arg14[%c16, %c0_33] : memref<36x256xbf16, #tpu.memory_space<vmem>>, vector<4x256xbf16>
    tpu.vector_store %arg14[%c16, %c0_33], %38 {strides = array<i32>} : memref<36x256xbf16, #tpu.memory_space<vmem>>, vector<4x256xbf16>,
    %c0_34 = arith.constant 0 : index
    %c65 = arith.constant 65 : index
    %40 = vector.load %arg12[%c0_34, %c65] : memref<4x384xbf16, #tpu.memory_space<vmem>>, vector<4x256xbf16>
    %c5 = arith.constant 5 : index
    %c0_35 = arith.constant 0 : index
    %41 = vector.load %arg6[%c5, %c0_35] : memref<9x256xbf16, #tpu.memory_space<vmem>>, vector<1x256xbf16>
    %42 = vector.broadcast %41 : vector<1x256xbf16> to vector<4x256xbf16>
    %43 = arith.mulf %40, %42 : vector<4x256xbf16>
    %c20 = arith.constant 20 : index
    %c0_36 = arith.constant 0 : index
    %44 = vector.load %arg14[%c20, %c0_36] : memref<36x256xbf16, #tpu.memory_space<vmem>>, vector<4x256xbf16>
    tpu.vector_store %arg14[%c20, %c0_36], %43 {strides = array<i32>} : memref<36x256xbf16, #tpu.memory_space<vmem>>, vector<4x256xbf16>,
    %c0_37 = arith.constant 0 : index
    %c71 = arith.constant 71 : index
    %45 = vector.load %arg12[%c0_37, %c71] : memref<4x384xbf16, #tpu.memory_space<vmem>>, vector<4x256xbf16>
    %c6 = arith.constant 6 : index
    %c0_38 = arith.constant 0 : index
    %46 = vector.load %arg6[%c6, %c0_38] : memref<9x256xbf16, #tpu.memory_space<vmem>>, vector<1x256xbf16>
    %47 = vector.broadcast %46 : vector<1x256xbf16> to vector<4x256xbf16>
    %48 = arith.mulf %45, %47 : vector<4x256xbf16>
    %c24 = arith.constant 24 : index
    %c0_39 = arith.constant 0 : index
    %49 = vector.load %arg14[%c24, %c0_39] : memref<36x256xbf16, #tpu.memory_space<vmem>>, vector<4x256xbf16>
    tpu.vector_store %arg14[%c24, %c0_39], %48 {strides = array<i32>} : memref<36x256xbf16, #tpu.memory_space<vmem>>, vector<4x256xbf16>,
    %c0_40 = arith.constant 0 : index
    %c72 = arith.constant 72 : index
    %50 = vector.load %arg12[%c0_40, %c72] : memref<4x384xbf16, #tpu.memory_space<vmem>>, vector<4x256xbf16>
    %c7 = arith.constant 7 : index
    %c0_41 = arith.constant 0 : index
    %51 = vector.load %arg6[%c7, %c0_41] : memref<9x256xbf16, #tpu.memory_space<vmem>>, vector<1x256xbf16>
    %52 = vector.broadcast %51 : vector<1x256xbf16> to vector<4x256xbf16>
    %53 = arith.mulf %50, %52 : vector<4x256xbf16>
    %c28 = arith.constant 28 : index
    %c0_42 = arith.constant 0 : index
    %54 = vector.load %arg14[%c28, %c0_42] : memref<36x256xbf16, #tpu.memory_space<vmem>>, vector<4x256xbf16>
    tpu.vector_store %arg14[%c28, %c0_42], %53 {strides = array<i32>} : memref<36x256xbf16, #tpu.memory_space<vmem>>, vector<4x256xbf16>,
    %c0_43 = arith.constant 0 : index
    %c73 = arith.constant 73 : index
    %55 = vector.load %arg12[%c0_43, %c73] : memref<4x384xbf16, #tpu.memory_space<vmem>>, vector<4x256xbf16>
    %c8_44 = arith.constant 8 : index
    %c0_45 = arith.constant 0 : index
    %56 = vector.load %arg6[%c8_44, %c0_45] : memref<9x256xbf16, #tpu.memory_space<vmem>>, vector<1x256xbf16>
    %57 = vector.broadcast %56 : vector<1x256xbf16> to vector<4x256xbf16>
    %58 = arith.mulf %55, %57 : vector<4x256xbf16>
    %c32 = arith.constant 32 : index
    %c0_46 = arith.constant 0 : index
    %59 = vector.load %arg14[%c32, %c0_46] : memref<36x256xbf16, #tpu.memory_space<vmem>>, vector<4x256xbf16>
    tpu.vector_store %arg14[%c32, %c0_46], %58 {strides = array<i32>} : memref<36x256xbf16, #tpu.memory_space<vmem>>, vector<4x256xbf16>,
    %c0_47 = arith.constant 0 : index
    %c0_48 = arith.constant 0 : index
    %60 = vector.load %arg4[%c0_47, %c0_48] : memref<9x36xbf16, #tpu.memory_space<vmem>>, vector<9x36xbf16>
    %c0_49 = arith.constant 0 : index
    %c0_50 = arith.constant 0 : index
    %61 = vector.load %arg14[%c0_49, %c0_50] : memref<36x256xbf16, #tpu.memory_space<vmem>>, vector<36x256xbf16>
    %cst_51 = arith.constant dense<0.000000e+00> : vector<9x256xf32>
    %62 = tpu.matmul %60, %61, %cst_51 {dimension_numbers = #tpu.dot_dimension_numbers<[1], [0], [0], [1], [0, 0, 1, 1], [], []>} : vector<9x36xbf16>, vector<36x256xbf16>, vector<9x256xf32> -> vector<9x256xf32>
    %c0_52 = arith.constant 0 : index
    %c0_53 = arith.constant 0 : index
    %63 = vector.load %arg5[%c0_52, %c0_53] : memref<9x1xf32, #tpu.memory_space<vmem>>, vector<9x1xf32>
    %64 = vector.broadcast %63 : vector<9x1xf32> to vector<9x256xf32>
    %65 = arith.addf %62, %64 : vector<9x256xf32>
    %cst_54 = arith.constant 0.000000e+00 : f32
    %66 = vector.broadcast %cst_54 : f32 to vector<9x256xf32>
    %67 = arith.maximumf %65, %66 : vector<9x256xf32>
    %68 = arith.truncf %67 : vector<9x256xf32> to vector<9x256xbf16>
    %c0_55 = arith.constant 0 : index
    %c64_56 = arith.constant 64 : index
    %69 = vector.load %arg13[%c0_55, %c64_56] : memref<9x384xbf16, #tpu.memory_space<vmem>>, vector<9x256xbf16>
    tpu.vector_store %arg13[%c0_55, %c64_56], %68 {strides = array<i32>} : memref<9x384xbf16, #tpu.memory_space<vmem>>, vector<9x256xbf16>,
    %c0_57 = arith.constant 0 : index
    %c0_58 = arith.constant 0 : index
    %70 = vector.load %arg13[%c0_57, %c0_58] : memref<9x384xbf16, #tpu.memory_space<vmem>>, vector<9x256xbf16>
    %c0_59 = arith.constant 0 : index
    %c0_60 = arith.constant 0 : index
    %71 = vector.load %arg15[%c0_59, %c0_60] : memref<27x256xbf16, #tpu.memory_space<vmem>>, vector<9x256xbf16>
    tpu.vector_store %arg15[%c0_59, %c0_60], %70 {strides = array<i32>} : memref<27x256xbf16, #tpu.memory_space<vmem>>, vector<9x256xbf16>,
    %c0_61 = arith.constant 0 : index
    %c64_62 = arith.constant 64 : index
    %72 = vector.load %arg13[%c0_61, %c64_62] : memref<9x384xbf16, #tpu.memory_space<vmem>>, vector<9x256xbf16>
    %c9 = arith.constant 9 : index
    %c0_63 = arith.constant 0 : index
    %73 = vector.load %arg15[%c9, %c0_63] : memref<27x256xbf16, #tpu.memory_space<vmem>>, vector<9x256xbf16>
    tpu.vector_store %arg15[%c9, %c0_63], %72 {strides = array<i32>} : memref<27x256xbf16, #tpu.memory_space<vmem>>, vector<9x256xbf16>,
    %c0_64 = arith.constant 0 : index
    %c128 = arith.constant 128 : index
    %74 = vector.load %arg13[%c0_64, %c128] : memref<9x384xbf16, #tpu.memory_space<vmem>>, vector<9x256xbf16>
    %c18 = arith.constant 18 : index
    %c0_65 = arith.constant 0 : index
    %75 = vector.load %arg15[%c18, %c0_65] : memref<27x256xbf16, #tpu.memory_space<vmem>>, vector<9x256xbf16>
    tpu.vector_store %arg15[%c18, %c0_65], %74 {strides = array<i32>} : memref<27x256xbf16, #tpu.memory_space<vmem>>, vector<9x256xbf16>,
    %c0_66 = arith.constant 0 : index
    %c0_67 = arith.constant 0 : index
    %76 = vector.load %arg7[%c0_66, %c0_67] : memref<4x27xbf16, #tpu.memory_space<vmem>>, vector<4x27xbf16>
    %c0_68 = arith.constant 0 : index
    %c0_69 = arith.constant 0 : index
    %77 = vector.load %arg15[%c0_68, %c0_69] : memref<27x256xbf16, #tpu.memory_space<vmem>>, vector<27x256xbf16>
    %cst_70 = arith.constant dense<0.000000e+00> : vector<4x256xf32>
    %78 = tpu.matmul %76, %77, %cst_70 {dimension_numbers = #tpu.dot_dimension_numbers<[1], [0], [0], [1], [0, 0, 1, 1], [], []>} : vector<4x27xbf16>, vector<27x256xbf16>, vector<4x256xf32> -> vector<4x256xf32>
    %c0_71 = arith.constant 0 : index
    %c0_72 = arith.constant 0 : index
    %79 = vector.load %arg8[%c0_71, %c0_72] : memref<4x1xf32, #tpu.memory_space<vmem>>, vector<4x1xf32>
    %80 = vector.broadcast %79 : vector<4x1xf32> to vector<4x256xf32>
    %81 = arith.addf %78, %80 : vector<4x256xf32>
    %cst_73 = arith.constant 0.000000e+00 : f32
    %82 = vector.broadcast %cst_73 : f32 to vector<4x256xf32>
    %83 = arith.maximumf %81, %82 : vector<4x256xf32>
    %c0_74 = arith.constant 0 : index
    %c0_75 = arith.constant 0 : index
    %84 = vector.load %arg9[%c0_74, %c0_75] : memref<16x4xbf16, #tpu.memory_space<vmem>>, vector<16x4xbf16>
    %85 = arith.truncf %83 : vector<4x256xf32> to vector<4x256xbf16>
    %cst_76 = arith.constant dense<0.000000e+00> : vector<16x256xf32>
    %86 = tpu.matmul %84, %85, %cst_76 {dimension_numbers = #tpu.dot_dimension_numbers<[1], [0], [0], [1], [0, 0, 1, 1], [], []>} : vector<16x4xbf16>, vector<4x256xbf16>, vector<16x256xf32> -> vector<16x256xf32>
    %c0_77 = arith.constant 0 : index
    %c0_78 = arith.constant 0 : index
    %87 = vector.load %arg10[%c0_77, %c0_78] : memref<16x1xf32, #tpu.memory_space<vmem>>, vector<16x1xf32>
    %88 = vector.broadcast %87 : vector<16x1xf32> to vector<16x256xf32>
    %89 = arith.addf %86, %88 : vector<16x256xf32>
    %90 = arith.addf %89, %1 : vector<16x256xf32>
    %cst_79 = arith.constant 0.000000e+00 : f32
    %91 = vector.broadcast %cst_79 : f32 to vector<16x256xf32>
    %92 = arith.maximumf %90, %91 : vector<16x256xf32>
    %c0_80 = arith.constant 0 : index
    %c0_81 = arith.constant 0 : index
    %c0_82 = arith.constant 0 : index
    %93 = vector.load %arg11[%c0_80, %c0_81, %c0_82] : memref<1x16x256xf32, #tpu.memory_space<vmem>>, vector<1x16x256xf32>
    %94 = vector.shape_cast %93 : vector<1x16x256xf32> to vector<16x256xf32>
    %95 = vector.shape_cast %92 : vector<16x256xf32> to vector<1x16x256xf32>
    tpu.vector_store %arg11[%c0_80, %c0_81, %c0_82], %95 {strides = array<i32>} : memref<1x16x256xf32, #tpu.memory_space<vmem>>, vector<1x16x256xf32>,
    return
  }
  func.func @transform_0(%arg0: i32) -> (i32, i32, i32) {
    %c0_i32 = arith.constant 0 : i32
    %c0_i32_0 = arith.constant 0 : i32
    %c0_i32_1 = arith.constant 0 : i32
    return %arg0, %c0_i32, %c0_i32_0 : i32, i32, i32
  }
  func.func @transform_1(%arg0: i32) -> (i32, i32) {
    %c0_i32 = arith.constant 0 : i32
    %c0_i32_0 = arith.constant 0 : i32
    %c0_i32_1 = arith.constant 0 : i32
    return %c0_i32, %c0_i32_0 : i32, i32
  }
  func.func @transform_2(%arg0: i32) -> (i32, i32) {
    %c0_i32 = arith.constant 0 : i32
    %c0_i32_0 = arith.constant 0 : i32
    %c0_i32_1 = arith.constant 0 : i32
    return %c0_i32, %c0_i32_0 : i32, i32
  }
  func.func @transform_3(%arg0: i32) -> (i32, i32) {
    %c0_i32 = arith.constant 0 : i32
    %c0_i32_0 = arith.constant 0 : i32
    %c0_i32_1 = arith.constant 0 : i32
    return %c0_i32, %c0_i32_0 : i32, i32
  }
  func.func @transform_4(%arg0: i32) -> (i32, i32) {
    %c0_i32 = arith.constant 0 : i32
    %c0_i32_0 = arith.constant 0 : i32
    %c0_i32_1 = arith.constant 0 : i32
    return %c0_i32, %c0_i32_0 : i32, i32
  }
  func.func @transform_5(%arg0: i32) -> (i32, i32) {
    %c0_i32 = arith.constant 0 : i32
    %c0_i32_0 = arith.constant 0 : i32
    %c0_i32_1 = arith.constant 0 : i32
    return %c0_i32, %c0_i32_0 : i32, i32
  }
  func.func @transform_6(%arg0: i32) -> (i32, i32) {
    %c0_i32 = arith.constant 0 : i32
    %c0_i32_0 = arith.constant 0 : i32
    %c0_i32_1 = arith.constant 0 : i32
    return %c0_i32, %c0_i32_0 : i32, i32
  }
  func.func @transform_7(%arg0: i32) -> (i32, i32) {
    %c0_i32 = arith.constant 0 : i32
    %c0_i32_0 = arith.constant 0 : i32
    %c0_i32_1 = arith.constant 0 : i32
    return %c0_i32, %c0_i32_0 : i32, i32
  }
  func.func @transform_8(%arg0: i32) -> (i32, i32) {
    %c0_i32 = arith.constant 0 : i32
    %c0_i32_0 = arith.constant 0 : i32
    %c0_i32_1 = arith.constant 0 : i32
    return %c0_i32, %c0_i32_0 : i32, i32
  }
  func.func @transform_9(%arg0: i32) -> (i32, i32) {
    %c0_i32 = arith.constant 0 : i32
    %c0_i32_0 = arith.constant 0 : i32
    %c0_i32_1 = arith.constant 0 : i32
    return %c0_i32, %c0_i32_0 : i32, i32
  }
  func.func @transform_10(%arg0: i32) -> (i32, i32, i32) {
    %c0_i32 = arith.constant 0 : i32
    %c0_i32_0 = arith.constant 0 : i32
    %c0_i32_1 = arith.constant 0 : i32
    return %arg0, %c0_i32, %c0_i32_0 : i32, i32, i32
  }
}

</mosaic_0001>

<bundles_post_ra>
// kernel: bottleneck_forward_pallas.1
= control target key start
LH: loop header
LB: loop body
LE: loop exit
PB: predicated region body
PF: predicated region fallthrough
CT: control target
= control target key end

     0   :  { %s1649_s13 = smov 0   ;;  %s1943_s0 = inlined_call_operand.vmem [shape: f32[2,16,256], index: 0, kind: input, shape index: {}]   ;;  %s1944_s1 = inlined_call_operand.vmem [shape: bf16[4,16], index: 1, kind: input, shape index: {}]   ;;  %s1945_s2 = inlined_call_operand.vmem [shape: f32[4,1], index: 2, kind: input, shape index: {}]   ;;  %s1946_s3 = inlined_call_operand.vmem [shape: bf16[9,36], index: 3, kind: input, shape index: {}]   ;;  %s1947_s4 = inlined_call_operand.vmem [shape: f32[9,1], index: 4, kind: input, shape index: {}]   ;;  %s1948_s5 = inlined_call_operand.vmem [shape: bf16[9,256], index: 5, kind: input, shape index: {}]   ;;  %s1949_s6 = inlined_call_operand.vmem [shape: bf16[4,27], index: 6, kind: input, shape index: {}]   ;;  %s1950_s7 = inlined_call_operand.vmem [shape: f32[4,1], index: 7, kind: input, shape index: {}]   ;;  %s1951_s8 = inlined_call_operand.vmem [shape: bf16[16,4], index: 8, kind: input, shape index: {}]   ;;  %s1952_s9 = inlined_call_operand.vmem [shape: f32[16,1], index: 9, kind: input, shape index: {}]   ;;  %s1953_s10 = inlined_call_operand.vmem [shape: f32[2,16,256], index: 10, kind: output, shape index: {}]  }
   0x1 LB: > { %s1470_s14 = sadd.s32 4294967295, %s1580_s13   ;;  %p1474_p0 = scmp.ge.s32.totalorder %s1580_s13, 1  ;;  %s1580_s13 = sphi %s1649_s13, %s20_s13  }
   0x2   : > { %p312_p1 = scmp.lt.s32.totalorder %s1580_s13, 3 }
   0x4   : > { %p313_p2 = pnand %p1474_p0, %p312_p1 }
   0x5   : > { %p350_p3 = scmp.lt.s32.totalorder (!%p313_p2), %s1470_s14, 1  ;;  %v1582_v0 = vmov (!%p313_p2), 0   ;;  %v387_v1 = vld [vmem:[%s1945_s2] sm:$0xf] (!%p313_p2)  ;;  %vm393_vm0 = vcmask (!%p313_p2), 130048   ;;  %v448_v9 = vlaneseq (!%p313_p2)  ;;  %s1584_s29 = smov (!%p313_p2), 55  }
   0x6   : > { %316 = sbr.rel (%p313_p2) target bundleno = 1474 (0x5c2), region = 60  ;;  %429 = vmatprep.mubr.bf16.mxu1 (!%p313_p2), %v1582_v0  ;;  %1542 = vset.pattern.permute.xlu0 (!%p313_p2), %v1582_v0  ;;  %v384_v8 = vld [vmem:[%s1944_s1] sm:$0x3] (!%p313_p2)  ;;  %v1583_v15 = vmov (!%p313_p2), 1983009808   ;;  %s1585_s12 = smov (!%p313_p2), 56  }
   0x7   : > { %390 = vperm.xlu0 (!%p313_p2), %1542, %v387_v1   ;;  %1543 = vset.pattern.permute.xlu1 (!%p313_p2), %v1582_v0  ;;  %v464_v10 = vld [vmem:[%s1948_s5] sm:$0x11] (!%p313_p2)  ;;  %v1691_v11 = vshrl.u32 (!%p313_p2), %v448_v9, 7  ;;  %v446_v16 = vunpack.c.l.s4 (!%p313_p2), %v1583_v15  ;;  %v662_v27 = vld [vmem:[%s1948_s5] sm:$0x22] (!%p313_p2)  ;;  %s1586_s18 = smov (!%p313_p2), 63  }
   0x8   : > { %1318 = vmatprep.mubr.bf16.mxu0 (!%p313_p2), %v1582_v0  ;;  %v1481_v12 = vcombine.low (!%p313_p2), %v464_v10, %v464_v10  ;;  %v1482_v13 = vcombine.high (!%p313_p2), %v464_v10, %v464_v10  ;;  %v530_v14 = vld [vmem:[%s1948_s5] sm:$0x11] (!%p313_p2)  ;;  %v1487_v30 = vcombine.low (!%p313_p2), %v662_v27, %v662_v27  ;;  %v1488_v31 = vcombine.high (!%p313_p2), %v662_v27, %v662_v27  ;;  %v821_v43 = vld [vmem:[%s1948_s5] sm:$0x88] (!%p313_p2)  ;;  %v949_v53 = vld [vmem:[%s1948_s5 + $0x8] sm:$0x11] (!%p313_p2) }
   0x9   : > { %v475_v18 = vsub.s32 (!%p313_p2), 0, %v1691_v11  ;;  %v1483_v20 = vcombine.low (!%p313_p2), %v530_v14, %v530_v14  ;;  %v1484_v21 = vcombine.high (!%p313_p2), %v530_v14, %v530_v14  ;;  %v447_v22 = vunpack.c.0.s8 (!%p313_p2), %v446_v16  ;;  %s1587_s19 = smov (!%p313_p2), 71   ;;  %v756_v9 = vld [vmem:[%s1948_s5] sm:$0x44] (!%p313_p2)  ;;  %v884_v15 = vld [vmem:[%s1948_s5] sm:$0x88] (!%p313_p2) }
   0xa   : > { %v471_v17 = vpack.i.b16 (!%p313_p2), %v1481_v12, %v1481_v12  ;;  %v478_v19 = vpack.i.b16 (!%p313_p2), %v1482_v13, %v1482_v13  ;;  %v669_v35 = vshrl.u32 (!%p313_p2), %v1487_v30, 16  ;;  %v677_v36 = vshrl.u32 (!%p313_p2), %v1488_v31, 16  ;;  %s1589_s27 = smov (!%p313_p2), 64   ;;  %s1590_s28 = smov (!%p313_p2), 57  }
   0xb   : > { %v537_v25 = vshrl.u32 (!%p313_p2), %v1483_v20, 16  ;;  %v545_v26 = vshrl.u32 (!%p313_p2), %v1484_v21, 16  ;;  %v1701_v28 = vsub.s32 (!%p313_p2), %v447_v22, %v1691_v11  ;;  %v608_v39 = vsub.s32 (!%p313_p2), 1, %v1691_v11  ;;  %s1591_s30 = smov (!%p313_p2), 65   ;;  %s1592_s11 = smov (!%p313_p2), 72  }
   0xc   : > { %v476_v23 = vrot.slane (!%p313_p2), %v471_v17, %v475_v18  ;;  %v483_v24 = vrot.slane (!%p313_p2), %v478_v19, %v475_v18  ;;  %v670_v40 = vpack.i.b16 (!%p313_p2), %v669_v35, %v669_v35  ;;  %v678_v41 = vpack.i.b16 (!%p313_p2), %v677_v36, %v677_v36 }
   0xd   : > { %s1969_s14 = smov (!%p350_p3, %s1470_s14), 1  ;;  %v538_v32 = vpack.i.b16 %v537_v25, %v537_v25  ;;  %v546_v33 = vpack.i.b16 %v545_v26, %v545_v26  ;;  %v1491_v46 = vcombine.low %v821_v43, %v821_v43  ;;  %v1492_v47 = vcombine.high %v821_v43, %v821_v43 }
   0xe   : > { %s1518_s17 = sshll.u32 %s1969_s14, 5  ;;  %v486_v29 = vcombine.low %v476_v23, %v483_v24  ;;  %v675_v44 = vrot.slane %v670_v40, %v608_v39  ;;  %v683_v45 = vrot.slane %v678_v41, %v608_v39  ;;  %v1711_v51 = vsub.s32 3, %v1691_v11 }
   0xf   : > { %s354_s20 = scalar_lea.vmem %s1943_s0, %s1518_s17  ;;  %v543_v37 = vrot.slane %v538_v32, %v475_v18  ;;  %v551_v38 = vrot.slane %v546_v33, %v475_v18  ;;  %v828_v50 = vpack.i.b16 %v1491_v46, %v1491_v46  ;;  %v835_v52 = vpack.i.b16 %v1492_v47, %v1492_v47  ;;  %s359_s16 = scalar_lea.vmem %s1953_s10, %s1518_s17 }
  0x10   : > { %v1672_v2 = vld [vmem:[%s354_s20 + $0x8] sm:$0xff]  ;;  %v1674_v3 = vld [vmem:[%s354_s20 + $0x18] sm:$0xff]  ;;  %v1676_v4 = vld [vmem:[%s354_s20] sm:$0xff]  ;;  %v493_v34 = vrot.slane %v486_v29, %v1701_v28  ;;  %v686_v49 = vcombine.low %v675_v44, %v683_v45  ;;  %v1495_v57 = vcombine.low %v949_v53, %v949_v53  ;;  %v1496_v58 = vcombine.high %v949_v53, %v949_v53 }
  0x11   : > { %v386_v5 = vpack.c.bf16 %v1674_v3, %v1672_v2  ;;  %v1680_v6 = vld [vmem:[%s354_s20 + $0x10] sm:$0xff]  ;;  %v554_v42 = vcombine.low %v543_v37, %v551_v38  ;;  %v833_v55 = vrot.slane %v828_v50, %v1711_v51  ;;  %v840_v56 = vrot.slane %v835_v52, %v1711_v51  ;;  %s1588_s20 = smov 73  }
  0x12   : > { %v385_v7 = vpack.c.bf16 %v1680_v6, %v1676_v4  ;;  %494 = vrot.lane.b32.xlu1 %v493_v34, %s1584_s29  ;;  %v693_v54 = vrot.slane %v686_v49, %v1701_v28  ;;  %v956_v60 = vpack.i.b16 %v1495_v57, %v1495_v57  ;;  %v963_v61 = vpack.i.b16 %v1496_v58, %v1496_v58 }
  0x13   : > { %397 = vmatprep.subr.bf16.mxu1 %v386_v5  ;;  %v561_v48 = vrot.slane %v554_v42, %v1701_v28  ;;  %v843_v59 = vcombine.low %v833_v55, %v840_v56  ;;  %vm365_vm1 = vcmask 517120   ;;  %vm367_vm2 = vcmask 1041920  }
  0x14   : > { %398 = vmatpush1.bf16.msra.mxu1 %v385_v7  ;;  %v961_v63 = vrot.slane %v956_v60, %v475_v18  ;;  %v968_v1 = vrot.slane %v963_v61, %v475_v18  ;;  %366 = vst.msk [vmem:[#allocation2] sm:$0x3] %vm365_vm1, %v1582_v0  ;;  %v1489_v13 = vcombine.low %v756_v9, %v756_v9  ;;  %v768_v30 = vsub.s32 2, %v1691_v11 }
  0x15   : > { %v850_v62 = vrot.slane %v843_v59, %v1701_v28  ;;  %368 = vst.msk [vmem:[#allocation2 + $0x4] sm:$0x3] %vm367_vm2, %v1582_v0  ;;  %v1490_v14 = vcombine.high %v756_v9, %v756_v9  ;;  %v1493_v21 = vcombine.low %v884_v15, %v884_v15  ;;  %v1494_v22 = vcombine.high %v884_v15, %v884_v15 }
  0x16   : > { %562 = vrot.lane.b32.xlu1 %v561_v48, %s1585_s12  ;;  %v971_v5 = vcombine.low %v961_v63, %v968_v1  ;;  %v763_v18 = vshrl.u32 %v1489_v13, 16  ;;  %vm458_vm3 = vcmask 1043458   ;;  %vm460_vm5 = vcmask 521220  }
  0x17   : > { %1479 = vmatmul.mubr.msk.bf16.vlgmr.msra.gmra.mrb[0].mxu1 %vm393_vm0, %v384_v8  ;;  %v597_v8 = vld [vmem:[%s1948_s5] sm:$0x22]  ;;  %v771_v20 = vshrl.u32 %v1490_v14, 16  ;;  %v891_v34 = vshrl.u32 %v1493_v21, 16  ;;  %v899_v35 = vshrl.u32 %v1494_v22, 16  ;;  %vm459_vm4 = vmor %vm458_vm3, %vm367_vm2  ;;  %vm455_vm6 = vcmask 523264  }
  0x18   : > { %1103 = vmatprep.mubr.bf16.mxu1 %v1582_v0  ;;  %v978_v7 = vrot.slane %v971_v5, %v1701_v28  ;;  %v1485_v10 = vcombine.low %v597_v8, %v597_v8  ;;  %v1486_v12 = vcombine.high %v597_v8, %v597_v8  ;;  %v764_v29 = vpack.i.b16 %v763_v18, %v763_v18  ;;  %vm461_vm7 = vmor %vm460_vm5, %vm459_vm4 }
  0x19   : > { %v772_v33 = vpack.i.b16 %v771_v20, %v771_v20  ;;  %v892_v44 = vpack.i.b16 %v891_v34, %v891_v34  ;;  %v900_v45 = vpack.i.b16 %v899_v35, %v899_v35  ;;  %vm565_vm8 = vcmask 457728  }
  0x1a   : > { %694 = vrot.lane.b32.xlu1 %v693_v54, %s1586_s18  ;;  %v604_v16 = vpack.i.b16 %v1485_v10, %v1485_v10  ;;  %v611_v17 = vpack.i.b16 %v1486_v12, %v1486_v12  ;;  %v769_v41 = vrot.slane %v764_v29, %v768_v30  ;;  %vm697_vm9 = vcmask 515072  }
  0x1b   : > { %v777_v43 = vrot.slane %v772_v33, %v768_v30  ;;  %v897_v47 = vrot.slane %v892_v44, %v1711_v51  ;;  %v905_v48 = vrot.slane %v900_v45, %v1711_v51  ;;  %vm497_vm10 = vcmask 449536  }
  0x1c   : > { %v609_v24 = vrot.slane %v604_v16, %v608_v39  ;;  %v616_v27 = vrot.slane %v611_v17, %v608_v39  ;;  %vm630_vm11 = vcmask 465920   ;;  %vm657_vm12 = vcmask 580608  }
  0x1d   : > { %v780_v39 = vcombine.low %v769_v41, %v777_v43  ;;  %v908_v50 = vcombine.low %v897_v47, %v905_v48  ;;  %vm724_vm13 = vcmask 531456   ;;  %vm592_vm14 = vcmask 588800  }
  0x1e   : > { %851 = vrot.lane.b32.xlu1 %v850_v62, %s1587_s19  ;;  %v619_v40 = vcombine.low %v609_v24, %v616_v27  ;;  %vm525_vm15 = vcmask 596992   ;;  %vm523_vm0 = vcmask 1043456   ;;  %vm1064_vm1 = vcmask 1041408  }
  0x1f   : > { %v787_v49 = vrot.slane %v780_v39, %v1701_v28  ;;  %v915_v52 = vrot.slane %v908_v50, %v1701_v28  ;;  %vm1060_vm2 = vcmask 293888   ;;  %vm369_vm3 = vcmask 519168  }
  0x20   : > { %v626_v11 = vrot.slane %v619_v40, %v1701_v28  ;;  %vm377_vm4 = vcmask 1043968   ;;  %370 = vst.msk [vmem:[#allocation3] sm:$0xf] %vm369_vm3, %v1582_v0  ;;  %vm372_vm5 = vsmask.f32 256 }
  0x21   : > { %378 = vst.msk [vmem:[#allocation3 + $0x8] sm:$0xf] %vm377_vm4, %v1582_v0 }
  0x22   : > { %979 = vrot.lane.b32.xlu1 %v978_v7, %s1588_s20 }
  0x84   : > { %v495_v53 = vpop.permute.xlu1 %494 }
  0x85   : > { %v496_v61 = vrot.slane %v495_v53, 6 }
  0x86   : > { %v391_v19 = vpop.permute.xlu0 %390 }
  0x87   : > { %v498_v13 = vsel %vm497_vm10, %v496_v61, %v495_v53 }
  0x88   : > { %v563_v54 = vpop.permute.xlu1 %562 }
  0x89   : > { %v564_v59 = vrot.slane %v563_v54, 6 }
  0x8b   : > { %v566_v5 = vsel %vm565_vm8, %v564_v59, %v563_v54 }
  0x8c   : > { %v695_v58 = vpop.permute.xlu1 %694 }
  0x8d   : > { %v696_v60 = vrot.slane %v695_v58, 6 }
  0x8f   : > { %v698_v7 = vsel %vm697_vm9, %v696_v60, %v695_v58 }
  0x90   : > { %v852_v8 = vpop.permute.xlu1 %851 }
  0x91   : > { %v853_v14 = vrot.slane %v852_v8, 6 }
  0xea   : > { %v431_v23 = vpop.f32.mrb[0].mxu1 }
  0xeb   : > { %v432_v25 = vadd.f32 %v431_v23, %v391_v19  ;;  %v433_v26 = vpop.f32.mrb[1].mxu1 }
  0xec   : > { %v434_v31 = vadd.f32 %v433_v26, %v391_v19  ;;  %v435_v32 = vpop.f32.mrb[2].mxu1  ;;  %v854_v26 = vsel %vm657_vm12, %v853_v14, %v852_v8 }
  0xed   : > { %v438_v36 = vmax.f32 %v432_v25, 0.0  ;;  %v436_v37 = vpop.f32.mrb[3].mxu1 }
  0xee   : > { %v439_v38 = vmax.f32 %v434_v31, 0.0 }
  0xf0   : > { %v1480_v42 = vpack.c.bf16 %v439_v38, %v438_v36 }
  0xf2   : > { %v451_v46 = vrot.slane %v1480_v42, %v1701_v28 }
  0xf4   : > { %452 = vrot.lane.b32.xlu0 %v451_v46, %s1589_s27 }
  0xf8   : > { %627 = vrot.lane.b32.xlu0 %v626_v11, %s1590_s28  ;;  %v980_v11 = vpop.permute.xlu1 %979 }
  0xf9   : > { %v981_v48 = vrot.slane %v980_v11, 6 }
  0xfb   : > { %v982_v54 = vsel %vm525_vm15, %v981_v48, %v980_v11 }
  0xfc   : > { %788 = vrot.lane.b32.xlu0 %v787_v49, %s1591_s30 }
 0x100   : > { %916 = vrot.lane.b32.xlu0 %v915_v52, %s1592_s11 }
 0x166   : > { %v453_v51 = vpop.permute.xlu0 %452 }
 0x167   : > { %v454_v55 = vrot.slane %v453_v51, 6 }
 0x169   : > { %v456_v56 = vsel %vm455_vm6, %v454_v55, %v453_v51 }
 0x16a   : > { %462 = vst.msk [vmem:[#allocation2] sm:$0x3f] %vm461_vm7, %v456_v56  ;;  %v628_v57 = vpop.permute.xlu0 %627  ;;  %vm379_vm7 = vcmask 1040896  }
 0x16b   : > { %v629_v62 = vrot.slane %v628_v57, 6 }
 0x16d   : > { %v631_v16 = vsel %vm630_vm11, %v629_v62, %v628_v57 }
 0x16e   : > { %v789_v63 = vpop.permute.xlu0 %788 }
 0x16f   : > { %v790_v23 = vrot.slane %v789_v63, 6 }
 0x171   : > { %v728_v1 = vld [vmem:[#allocation2] sm:$0x3f]  ;;  %v791_v33 = vsel %vm724_vm13, %v790_v23, %v789_v63 }
 0x172   : > { %v737_v9 = vrot.slane %v728_v1, %v1701_v28  ;;  %v529_v10 = vld [vmem:[#allocation2] sm:$0x3f]  ;;  %v917_v27 = vpop.permute.xlu0 %916  ;;  %v730_v30 = vcombine.high %v728_v1, %v728_v1 }
 0x173   : > { %v463_v12 = vld [vmem:[#allocation2] sm:$0x3f]  ;;  %v568_v17 = vmul.bf16 %v566_v5, %v529_v10  ;;  %v918_v34 = vrot.slane %v917_v27, 6 }
 0x174   : > { %v596_v15 = vld [vmem:[#allocation2] sm:$0x3f]  ;;  %745 = vrot.lane.b32.xlu0 %v737_v9, %s1589_s27  ;;  %v500_v19 = vmul.bf16 %v498_v13, %v463_v12  ;;  %v744_v37 = vrot.slane %v730_v30, %v1701_v28 }
 0x175   : > { %v661_v18 = vld [vmem:[#allocation2] sm:$0x3f]  ;;  %v584_v20 = vrot.slane %v568_v17, %v1701_v28  ;;  %v633_v22 = vmul.bf16 %v631_v16, %v596_v15  ;;  %v919_v38 = vsel %vm592_vm14, %v918_v34, %v917_v27  ;;  %v570_v41 = vcombine.low %v568_v17, %v568_v17 }
 0x176   : > { %v700_v21 = vmul.bf16 %v698_v7, %v661_v18  ;;  %v509_v24 = vrot.slane %v500_v19, %v1701_v28  ;;  %v820_v25 = vld [vmem:[#allocation2] sm:$0x3f]  ;;  %v502_v47 = vcombine.high %v500_v19, %v500_v19  ;;  %v1019_v7 = vld [vmem:[%s1947_s4 + $0x8] sm:$0x1] }
 0x177   : > { %587 = vrot.lane.b32.xlu1 %v584_v20, %s1592_s11  ;;  %v856_v31 = vmul.bf16 %v854_v26, %v820_v25  ;;  %v755_v32 = vld [vmem:[#allocation2] sm:$0x3f]  ;;  %v642_v35 = vrot.slane %v633_v22, %v1701_v28  ;;  %v577_v45 = vrot.slane %v570_v41, %v1701_v28  ;;  %v635_v52 = vcombine.high %v633_v22, %v633_v22 }
 0x178   : > { %517 = vrot.lane.b32.xlu0 %v509_v24, %s1588_s20  ;;  %v716_v29 = vrot.slane %v700_v21, %v1701_v28  ;;  %v793_v36 = vmul.bf16 %v791_v33, %v755_v32  ;;  %v883_v42 = vld [vmem:[#allocation2] sm:$0x3f]  ;;  %v702_v46 = vcombine.low %v700_v21, %v700_v21  ;;  %v516_v53 = vrot.slane %v502_v47, %v1701_v28 }
 0x179   : > { %v865_v40 = vrot.slane %v856_v31, %v1701_v28  ;;  %v921_v43 = vmul.bf16 %v919_v38, %v883_v42  ;;  %v948_v51 = vld [vmem:[#allocation2] sm:$0x3f]  ;;  %v858_v57 = vcombine.high %v856_v31, %v856_v31  ;;  %v649_v59 = vrot.slane %v635_v52, %v1701_v28 }
 0x17a   : > { %v809_v44 = vrot.slane %v793_v36, %v1701_v28  ;;  %v795_v49 = vcombine.low %v793_v36, %v793_v36  ;;  %v709_v50 = vrot.slane %v702_v46, %v1701_v28  ;;  %v984_v58 = vmul.bf16 %v982_v54, %v948_v51  ;;  %v1018_v5 = vld [vmem:[%s1947_s4] sm:$0xff] }
 0x17b   : > { %719 = vrot.lane.b32.xlu1 %v716_v29, %s1591_s30  ;;  %v937_v39 = vrot.slane %v921_v43, %v1701_v28  ;;  %v923_v55 = vcombine.low %v921_v43, %v921_v43  ;;  %v872_v62 = vrot.slane %v858_v57, %v1701_v28 }
 0x17c   : > { %650 = vrot.lane.b32.xlu0 %v642_v35, %s1587_s19  ;;  %v802_v56 = vrot.slane %v795_v49, %v1701_v28  ;;  %v986_v61 = vcombine.high %v984_v58, %v984_v58  ;;  %v993_v63 = vrot.slane %v984_v58, %v1701_v28 }
 0x17d   : > { %v930_v60 = vrot.slane %v923_v55, %v1701_v28 }
 0x17e   : > { %v1000_v1 = vrot.slane %v986_v61, %v1701_v28 }
 0x17f   : > { %747 = vrot.lane.b32.xlu1 %v744_v37, %s1589_s27 }
 0x180   : > { %873 = vrot.lane.b32.xlu0 %v865_v40, %s1590_s28 }
 0x183   : > { %812 = vrot.lane.b32.xlu1 %v809_v44, %s1586_s18 }
 0x184   : > { %585 = vrot.lane.b32.xlu0 %v577_v45, %s1592_s11 }
 0x187   : > { %940 = vrot.lane.b32.xlu1 %v937_v39, %s1585_s12 }
 0x188   : > { %717 = vrot.lane.b32.xlu0 %v709_v50, %s1591_s30 }
 0x18b   : > { %519 = vrot.lane.b32.xlu1 %v516_v53, %s1588_s20 }
 0x18c   : > { %810 = vrot.lane.b32.xlu0 %v802_v56, %s1586_s18 }
 0x18f   : > { %652 = vrot.lane.b32.xlu1 %v649_v59, %s1587_s19 }
 0x190   : > { %938 = vrot.lane.b32.xlu0 %v930_v60, %s1585_s12 }
 0x193   : > { %875 = vrot.lane.b32.xlu1 %v872_v62, %s1590_s28 }
 0x194   : > { %1001 = vrot.lane.b32.xlu0 %v993_v63, %s1584_s29 }
 0x197   : > { %1003 = vrot.lane.b32.xlu1 %v1000_v1, %s1584_s29 }
 0x198   : > { %1022 = vperm.xlu0 %1542, %v1018_v5  }
 0x19b   : > { %1027 = vperm.xlu1 %1543, %v1019_v7  }
 0x1e6   : > { %v746_v8 = vpop.permute.xlu0 %745 }
 0x1e7   : > { %v749_v28 = vrot.slane %v746_v8, 4 }
 0x1e9   : > { %v588_v9 = vpop.permute.xlu1 %587 }
 0x1ea   : > { %v518_v10 = vpop.permute.xlu0 %517  ;;  %v590_v21 = vrot.slane %v588_v9, 4 }
 0x1eb   : > { %v521_v32 = vrot.slane %v518_v10, 4 }
 0x1ed   : > { %v720_v12 = vpop.permute.xlu1 %719 }
 0x1ee   : > { %v651_v13 = vpop.permute.xlu0 %650  ;;  %v722_v27 = vrot.slane %v720_v12, 4  ;;  %v1569_v12 = vld [vmem:[%s1946_s3] sm:$0x1f]  }
 0x1ef   : > { %v654_v43 = vrot.slane %v651_v13, 4 }
 0x1f1   : > { %v748_v14 = vpop.permute.xlu1 %747 }
 0x1f2   : > { %v750_v15 = vrot.slane %v748_v14, 4  ;;  %v874_v16 = vpop.permute.xlu0 %873  ;;  %v381_v14 = vld [vmem:[#allocation3 + $0x14] sm:$0x1] }
 0x1f3   : > { %v877_v52 = vrot.slane %v874_v16, 4 }
 0x1f4   : > { %v751_v17 = vsel %vm523_vm0, %v749_v28, %v750_v15  ;;  %v374_v15 = vld [vmem:[#allocation3 + $0xc] sm:$0x1] }
 0x1f5   : > { %v752_v18 = vsel %vm455_vm6, %v746_v8, %v751_v17  ;;  %v813_v19 = vpop.permute.xlu1 %812 }
 0x1f6   : > { %754 = vst [vmem:[#allocation4 + $0x10] sm:$0x33] %v752_v18  ;;  %v586_v20 = vpop.permute.xlu0 %585  ;;  %v815_v36 = vrot.slane %v813_v19, 4 }
 0x1f7   : > { %v589_v22 = vrot.slane %v586_v20, 4 }
 0x1f9   : > { %v591_v23 = vsel %vm523_vm0, %v589_v22, %v590_v21  ;;  %v941_v24 = vpop.permute.xlu1 %940 }
 0x1fa   : > { %v593_v25 = vsel %vm592_vm14, %v586_v20, %v591_v23  ;;  %v718_v26 = vpop.permute.xlu0 %717  ;;  %v943_v11 = vrot.slane %v941_v24, 4 }
 0x1fb   : > { %595 = vst [vmem:[#allocation4] sm:$0xcc] %v593_v25  ;;  %v721_v29 = vrot.slane %v718_v26, 4 }
 0x1fd   : > { %v723_v30 = vsel %vm523_vm0, %v721_v29, %v722_v27  ;;  %v520_v31 = vpop.permute.xlu1 %519 }
 0x1fe   : > { %v725_v33 = vsel %vm724_vm13, %v718_v26, %v723_v30  ;;  %v522_v34 = vrot.slane %v520_v31, 4  ;;  %v811_v35 = vpop.permute.xlu0 %810  ;;  %vm1140_vm13 = vcmask 1047556  }
 0x1ff   : > { %727 = vst [vmem:[#allocation4 + $0x8] sm:$0xcc] %v725_v33  ;;  %v814_v37 = vrot.slane %v811_v35, 4 }
 0x200   : > { %v524_v38 = vsel %vm523_vm0, %v521_v32, %v522_v34 }
 0x201   : > { %v526_v40 = vsel %vm525_vm15, %v518_v10, %v524_v38  ;;  %v816_v41 = vsel %vm523_vm0, %v814_v37, %v815_v36  ;;  %v653_v42 = vpop.permute.xlu1 %652  ;;  %vm1141_vm15 = vmor %vm1140_vm13, %vm377_vm4  ;;  %vm1157_vm4 = vcmask 1040384  }
 0x202   : > { %528 = vst [vmem:[#allocation4] sm:$0x33] %v526_v40  ;;  %v817_v44 = vsel %vm697_vm9, %v811_v35, %v816_v41  ;;  %v655_v45 = vrot.slane %v653_v42, 4  ;;  %v939_v46 = vpop.permute.xlu0 %938  ;;  %vm1828_vm9 = vmand %vm379_vm7, %vm372_vm5  ;;  %vm1234_vm7 = vsmask.f32 1280 }
 0x203   : > { %819 = vst [vmem:[#allocation4 + $0x10] sm:$0xcc] %v817_v44  ;;  %v942_v39 = vrot.slane %v939_v46, 4 }
 0x204   : > { %v656_v47 = vsel %vm523_vm0, %v654_v43, %v655_v45 }
 0x205   : > { %v658_v48 = vsel %vm657_vm12, %v651_v13, %v656_v47  ;;  %v944_v49 = vsel %vm523_vm0, %v942_v39, %v943_v11  ;;  %v876_v50 = vpop.permute.xlu1 %875  ;;  %vm1145_vm12 = vsmask.f32 4352  ;;  %v1243_v11 = vld [vmem:[%s1949_s6] sm:$0x3] }
 0x206   : > { %660 = vst [vmem:[#allocation4 + $0x8] sm:$0x33] %v658_v48  ;;  %v945_v53 = vsel %vm565_vm8, %v939_v46, %v944_v49  ;;  %v878_v51 = vrot.slane %v876_v50, 4  ;;  %v1002_v54 = vpop.permute.xlu0 %1001  ;;  %vm371_vm8 = vcmask 516096  }
 0x207   : > { %947 = vst [vmem:[#allocation4 + $0x18] sm:$0xcc] %v945_v53  ;;  %v1005_v58 = vrot.slane %v1002_v54, 4  ;;  %v1160_v53 = vld [vmem:[#allocation5 + $0x8] sm:$0x11] }
 0x208   : > { %v879_v55 = vsel %vm523_vm0, %v877_v52, %v878_v51 }
 0x209   : > { %v880_v56 = vsel %vm630_vm11, %v874_v16, %v879_v55  ;;  %v1004_v57 = vpop.permute.xlu1 %1003  ;;  %v382_v16 = vsel %vm1828_vm9, 0, %v381_v14  ;;  %vm1144_vm11 = vcmask 1044484  }
 0x20a   : > { %882 = vst [vmem:[#allocation4 + $0x18] sm:$0x33] %v880_v56  ;;  %v1006_v59 = vrot.slane %v1004_v57, 4  ;;  %383 = vst [vmem:[#allocation3 + $0x14] sm:$0x1] %v382_v16 }
 0x20b   : > { %vm1844_vm14 = vmand %vm1144_vm11, %vm1145_vm12 }
 0x20c   : > { %v1007_v60 = vsel %vm523_vm0, %v1005_v58, %v1006_v59  ;;  %vm1861_vm12 = vmand %vm1157_vm4, %vm372_vm5 }
 0x20d   : > { %v1008_v61 = vsel %vm497_vm10, %v1002_v54, %v1007_v60  ;;  %v1561_v62 = vld [vmem:[#allocation4] ss:$8 sps:$4 sm:$0xff]   ;;  %v1563_v63 = vld [vmem:[#allocation4 + $0x4] ss:$8 sps:$4 sm:$0xff]   ;;  %vm1833_vm10 = vmand %vm371_vm8, %vm372_vm5  ;;  %vm1236_vm8 = vcmask 1045508  }
 0x20e   : > { %1010 = vst [vmem:[#allocation4 + $0x20] sm:$0x33] %v1008_v61  ;;  %1071 = vmatprep.subr.bf16.mxu1 %v1563_v63  ;;  %v375_v17 = vsel %vm1833_vm10, 0, %v374_v15 }
 0x20f   : > { %1072 = vmatpush1.bf16.msra.mxu1 %v1561_v62  ;;  %376 = vst [vmem:[#allocation3 + $0xc] sm:$0x1] %v375_v17 }
 0x211   : > { %v1564_v1 = vld [vmem:[#allocation4 + $0x10] ss:$8 sps:$4 sm:$0xff]   ;;  %v1566_v5 = vld [vmem:[#allocation4 + $0x14] ss:$8 sps:$4 sm:$0xff]  }
 0x212   : > { %1073 = vmatprep.subr.bf16.mxu1 %v1566_v5  ;;  %v1151_v38 = vld [vmem:[#allocation3 + $0x14] sm:$0x1] }
 0x213   : > { %1074 = vmatpush1.bf16.msra.mxu1 %v1564_v1  ;;  %v1240_v1 = vld [vmem:[#allocation5 + $0x18] sm:$0x33] }
 0x215   : > { %v1017_v7 = vld [vmem:[#allocation4 + $0x20] sm:$0x33] }
 0x216   : > { %v1503_v8 = vcombine.high %v1017_v7, %v1017_v7  ;;  %v1502_v9 = vcombine.low %v1017_v7, %v1017_v7  ;;  %v1148_v42 = vld [vmem:[#allocation3 + $0xc] sm:$0x11] }
 0x217   : > { %v1023_v18 = vpop.permute.xlu0 %1022 }
 0x218   : > { %1504 = vmatprep.subr.msk.bf16.mxu1 %vm1064_vm1, %v1503_v8  ;;  %v1066_v10 = vsel %vm1064_vm1, %v1502_v9, 0 }
 0x219   : > { %1076 = vmatpush1.bf16.msra.mxu1 %v1066_v10 }
 0x21a   : > { %v1028_v20 = vpop.permute.xlu1 %1027 }
 0x21c   : > { %1505 = vmatmul.mubr.msk.bf16.vlgmr.msra.gmra.mrb[4].mxu1 %vm1060_vm2, %v1569_v12  ;;  %vm1147_vm2 = vmor %vm1844_vm14, %vm1828_vm9 }
 0x21d   : > { %vm1866_vm9 = vmand %vm1064_vm1, %vm1234_vm7 }
 0x21e   : > { %vm1884_vm7 = vmor %vm1157_vm4, %vm1144_vm11 }
 0x2ef   : > { %v1105_v19 = vpop.f32.mrb[4].mxu1 }
 0x2f0   : > { %v1106_v21 = vadd.f32 %v1105_v19, %v1023_v18  ;;  %v1107_v22 = vpop.f32.mrb[5].mxu1  ;;  %v1333_v19 = vld [vmem:[%s1952_s9] sm:$0xff] }
 0x2f1   : > { %v1108_v23 = vadd.f32 %v1107_v22, %v1023_v18  ;;  %v1109_v24 = vpop.f32.mrb[6].mxu1 }
 0x2f2   : > { %v1114_v25 = vmax.f32 %v1106_v21, 0.0  ;;  %v1110_v26 = vadd.f32 %v1109_v24, %v1028_v20  ;;  %v1111_v27 = vpop.f32.mrb[7].mxu1  ;;  %v1334_v21 = vld [vmem:[%s1952_s9 + $0x8] sm:$0xff] }
 0x2f3   : > { %v1115_v29 = vmax.f32 %v1108_v23, 0.0  ;;  %v1112_v30 = vadd.f32 %v1111_v27, %v1028_v20  ;;  %v1248_v20 = vld [vmem:[%s1950_s7] sm:$0xf] }
 0x2f4   : > { %v1116_v31 = vmax.f32 %v1110_v26, 0.0 }
 0x2f5   : > { %v1520_v32 = vpack.c.bf16 %v1115_v29, %v1114_v25  ;;  %v1117_v33 = vmax.f32 %v1112_v30, 0.0 }
 0x2f7   : > { %v1521_v34 = vpack.c.bf16 %v1117_v33, %v1116_v31  ;;  %1128 = vrot.lane.b32.xlu0 %v1520_v32, %s1589_s27 }
 0x2f9   : > { %1130 = vrot.lane.b32.xlu1 %v1521_v34, %s1589_s27 }
 0x369   : > { %v1129_v35 = vpop.permute.xlu0 %1128 }
 0x36a   : > { %v1132_v37 = vrot.slane %v1129_v35, 4 }
 0x36b   : > { %v1131_v40 = vpop.permute.xlu1 %1130 }
 0x36c   : > { %v1134_v41 = vsel %vm455_vm6, %v1132_v37, %v1129_v35  ;;  %1143 = vst.msk [vmem:[#allocation3 + $0x8] sm:$0xf] %vm369_vm3, %v1132_v37  ;;  %v1133_v43 = vrot.slane %v1131_v40, 4  ;;  %vm1237_vm3 = vsmask.f32 5376 }
 0x36d   : > { %1142 = vst.msk [vmem:[#allocation3] sm:$0xff] %vm1141_vm15, %v1134_v41  ;;  %vm1159_vm15 = vmor %vm1844_vm14, %vm1861_vm12  ;;  %vm1214_vm14 = vsmask.f32 7954 }
 0x36e   : > { %v1135_v44 = vsel %vm455_vm6, %v1133_v43, %v1131_v40  ;;  %v1152_v45 = vsel %vm1833_vm10, %v1133_v43, %v1151_v38  ;;  %vm1870_vm10 = vmand %vm1236_vm8, %vm1237_vm3  ;;  %v1593_v40 = vmov 65535  }
 0x36f   : > { %v1149_v46 = vsel %vm1147_vm2, %v1135_v44, %v1148_v42  ;;  %1153 = vst [vmem:[#allocation3 + $0x14] sm:$0x1] %v1152_v45  ;;  %vm1167_vm2 = vsmask.f32 4368  ;;  %vm1239_vm8 = vmor %vm1870_vm10, %vm1866_vm9  ;;  %vm1277_vm9 = vcmask 1045504  }
 0x370   : > { %1150 = vst [vmem:[#allocation3 + $0xc] sm:$0x11] %v1149_v46  ;;  %vm1168_vm11 = vmor %vm372_vm5, %vm1167_vm2  ;;  %vm1211_vm5 = vsmask.f32 7938 }
 0x371   : > { %vm1212_vm4 = vmand %vm523_vm0, %vm1211_vm5 }
 0x372   : > { %vm1215_vm3 = vmand %vm1140_vm13, %vm1214_vm14  ;;  %vm1276_vm13 = vcmask 1044480  }
 0x373   : > { %v1164_v47 = vld [vmem:[#allocation3 + $0x8] sm:$0xf]  ;;  %vm1216_vm12 = vmor %vm1215_vm3, %vm1212_vm4  ;;  %v1278_v41 = vsel %vm1276_vm13, 4294967295, %v1593_v40 }
 0x374   : > { %v1221_v49 = vld [vmem:[#allocation3 + $0x4] sm:$0xff]  ;;  %v1177_v50 = vshrl.u32 %v1164_v47, 16  ;;  %v1180_v56 = vshll.u32 %v1164_v47, 16  ;;  %v1279_v42 = vsel %vm1277_vm9, %v1278_v41, 0 }
 0x375   : > { %v1874_v52 = vld [vmem:[#allocation3] sm:$0xff]  ;;  %v1226_v51 = vrot.slane %v1221_v49, 7 }
 0x376   : > { %v1170_v54 = vshrl.u32 %v1874_v52, 16  ;;  %v1179_v55 = vrot.slane %v1177_v50, 7  ;;  %v1173_v57 = vshll.u32 %v1874_v52, 16  ;;  %v1166_v58 = vld [vmem:[#allocation3 + $0x14] sm:$0x1] }
 0x377   : > { %v1155_v60 = vld [vmem:[#allocation3 + $0xc] sm:$0x11]  ;;  %v1227_v62 = vrot.slane %v1226_v51, 4  ;;  %1232 = vst [vmem:[#allocation5 + $0x10] sm:$0xee] %v1226_v51  ;;  %v1190_v13 = vshll.u32 %v1166_v58, 16 }
 0x378   : > { %v1222_v61 = vld [vmem:[#allocation3 + $0x10] sm:$0x11]  ;;  %v1172_v63 = vrot.slane %v1170_v54, 7  ;;  %v1161_v5 = vsel %vm1159_vm15, %v1155_v60, %v1160_v53  ;;  %v1182_v8 = vor.u32 %v1180_v56, %v1179_v55  ;;  %v1188_v12 = vrot.slane %v1179_v55, 4 }
 0x379   : > { %v1228_v7 = vrot.slane %v1222_v61, 7  ;;  %v1165_v9 = vld [vmem:[#allocation3 + $0xc] sm:$0x11]  ;;  %1162 = vst [vmem:[#allocation5 + $0x8] sm:$0x11] %v1161_v5 }
 0x37a   : > { %v1175_v10 = vor.u32 %v1173_v57, %v1172_v63  ;;  %1195 = vrot.lane.b32.xlu1 %v1182_v8, %s1589_s27  ;;  %v1183_v28 = vrot.slane %v1172_v63, 4  ;;  %v1185_v15 = vshll.u32 %v1165_v9, 16  ;;  %v1192_v17 = vsel %vm1168_vm11, %v1188_v12, %v1190_v13 }
 0x37b   : > { %v1229_v14 = vsel %vm1884_vm7, %v1227_v62, %v1228_v7 }
 0x37c   : > { %v1241_v16 = vsel %vm1239_vm8, %v1229_v14, %v1240_v1  ;;  %1193 = vrot.lane.b32.xlu0 %v1175_v10, %s1589_s27  ;;  %v1187_v18 = vsel %vm1168_vm11, %v1183_v28, %v1185_v15 }
 0x37d   : > { %1242 = vst [vmem:[#allocation5 + $0x18] sm:$0x33] %v1241_v16 }
 0x37e   : > { %1199 = vrot.lane.b32.xlu1 %v1192_v17, %s1589_s27 }
 0x380   : > { %1197 = vrot.lane.b32.xlu0 %v1187_v18, %s1589_s27  ;;  %v1217_v29 = vld [vmem:[#allocation5 + $0x8] sm:$0xff] }
 0x382   : > { %1337 = vperm.xlu1 %1543, %v1333_v19  }
 0x384   : > { %1251 = vperm.xlu0 %1542, %v1248_v20  }
 0x388   : > { %1342 = vperm.xlu0 %1542, %v1334_v21  }
 0x3ec   : > { %v1196_v22 = vpop.permute.xlu1 %1195 }
 0x3ed   : > { %v1202_v23 = vrot.slane %v1196_v22, 4 }
 0x3ee   : > { %v1194_v24 = vpop.permute.xlu0 %1193 }
 0x3ef   : > { %v1201_v25 = vrot.slane %v1194_v24, 4 }
 0x3f0   : > { %v1200_v27 = vpop.permute.xlu1 %1199 }
 0x3f1   : > { %v1205_v26 = vsel %vm523_vm0, %v1201_v25, %v1202_v23  ;;  %v1204_v31 = vrot.slane %v1200_v27, 4 }
 0x3f2   : > { %v1206_v30 = vsel %vm455_vm6, %v1194_v24, %v1205_v26  ;;  %v1198_v32 = vpop.permute.xlu0 %1197 }
 0x3f3   : > { %v1218_v33 = vsel %vm1216_vm12, %v1206_v30, %v1217_v29  ;;  %v1203_v34 = vrot.slane %v1198_v32, 4 }
 0x3f4   : > { %1219 = vst [vmem:[#allocation5 + $0x8] sm:$0xff] %v1218_v33  ;;  %v1509_v35 = vcombine.high %v1874_v52, %v1218_v33  ;;  %v1508_v36 = vcombine.low %v1874_v52, %v1218_v33 }
 0x3f5   : > { %v1207_v37 = vsel %vm523_vm0, %v1203_v34, %v1204_v31  ;;  %vm1272_vm0 = vcmask 220160  }
 0x3f6   : > { %v1208_v38 = vsel %vm455_vm6, %v1198_v32, %v1207_v37  ;;  %1286 = vmatprep.subr.bf16.mxu0 %v1509_v35  ;;  %vm1350_vm6 = vcmask 31744  }
 0x3f7   : > { %1220 = vst [vmem:[#allocation5 + $0x10] sm:$0x11] %v1208_v38  ;;  %1287 = vmatpush1.bf16.msra.mxu0 %v1508_v36 }
 0x3fe   : > { %v1570_v43 = vld [vmem:[#allocation5 + $0x14] ss:$8 sps:$4 sm:$0x3f]   ;;  %v1572_v44 = vld [vmem:[#allocation5 + $0x10] ss:$8 sps:$4 sm:$0x3f]  }
 0x3ff   : > { %v1284_v45 = vand.u32 %v1570_v43, %v1279_v42  ;;  %v1281_v46 = vand.u32 %v1572_v44, %v1279_v42 }
 0x401   : > { %1288 = vmatprep.subr.bf16.mxu0 %v1284_v45  ;;  %v1338_v58 = vpop.permute.xlu1 %1337 }
 0x402   : > { %1289 = vmatpush1.bf16.msra.mxu0 %v1281_v46 }
 0x403   : > { %v1252_v39 = vpop.permute.xlu0 %1251 }
 0x405   : > { %1512 = vmatmul.mubr.msk.bf16.vlgmr.msra.gmra.mrb[0].mxu0 %vm1272_vm0, %v1243_v11 }
 0x406   : > { %1392 = vmatprep.mubr.bf16.mxu0 %v1582_v0  ;;  %v1573_v0 = vld [vmem:[%s1951_s8] sm:$0xff]  }
 0x407   : > { %v1343_v62 = vpop.permute.xlu0 %1342 }
 0x4d8   : > { %v1320_v47 = vpop.f32.mrb[0].mxu0 }
 0x4d9   : > { %v1321_v48 = vadd.f32 %v1320_v47, %v1252_v39  ;;  %v1322_v49 = vpop.f32.mrb[1].mxu0 }
 0x4da   : > { %v1323_v50 = vadd.f32 %v1322_v49, %v1252_v39  ;;  %v1324_v52 = vpop.f32.mrb[2].mxu0 }
 0x4db   : > { %v1327_v53 = vmax.f32 %v1321_v48, 0.0  ;;  %v1325_v51 = vpop.f32.mrb[3].mxu0 }
 0x4dc   : > { %v1328_v54 = vmax.f32 %v1323_v50, 0.0 }
 0x4dd   : > { %v1331_v55 = vpack.c.bf16 %v1327_v53, %v1327_v53 }
 0x4de   : > { %v1332_v56 = vpack.c.bf16 %v1328_v54, %v1328_v54 }
 0x4df   : > { %v1355_v57 = vsel %vm1064_vm1, %v1331_v55, 0 }
 0x4e0   : > { %1514 = vmatprep.subr.msk.bf16.mxu0 %vm1064_vm1, %v1332_v56 }
 0x4e1   : > { %1361 = vmatpush1.bf16.msra.mxu0 %v1355_v57 }
 0x4e4   : > { %1515 = vmatmul.mubr.msk.bf16.vlgmr.msra.gmra.mrb[4].mxu0 %vm1350_vm6, %v1573_v0 }
 0x5b7   : > { %v1394_v59 = vpop.f32.mrb[4].mxu0 }
 0x5b8   : > { %v1395_v60 = vadd.f32 %v1394_v59, %v1338_v58  ;;  %v1396_v61 = vpop.f32.mrb[5].mxu0 }
 0x5b9   : > { %v1397_v63 = vadd.f32 %v1396_v61, %v1338_v58  ;;  %v1398_v1 = vpop.f32.mrb[6].mxu0 }
 0x5ba   : > { %v1403_v5 = vadd.f32 %v1395_v60, %v1676_v4  ;;  %v1399_v7 = vadd.f32 %v1398_v1, %v1343_v62  ;;  %v1400_v8 = vpop.f32.mrb[7].mxu0 }
 0x5bb   : > { %v1404_v9 = vadd.f32 %v1397_v63, %v1672_v2  ;;  %v1401_v10 = vadd.f32 %v1400_v8, %v1343_v62 }
 0x5bc   : > { %v1407_v12 = vmax.f32 %v1403_v5, 0.0  ;;  %v1405_v13 = vadd.f32 %v1399_v7, %v1680_v6 }
 0x5bd   : > { %v1408_v14 = vmax.f32 %v1404_v9, 0.0  ;;  %v1406_v28 = vadd.f32 %v1401_v10, %v1674_v3 }
 0x5be   : > { %1411 = vst [vmem:[%s359_s16] sm:$0xff] %v1407_v12  ;;  %v1409_v15 = vmax.f32 %v1405_v13, 0.0 }
 0x5bf   : > { %1412 = vst [vmem:[%s359_s16 + $0x8] sm:$0xff] %v1408_v14  ;;  %v1410_v4 = vmax.f32 %v1406_v28, 0.0 }
 0x5c0   : > { %1413 = vst [vmem:[%s359_s16 + $0x10] sm:$0xff] %v1409_v15 }
 0x5c1   : > { %1414 = vst [vmem:[%s359_s16 + $0x18] sm:$0xff] %v1410_v4 }
 0x5c2 PF: > { %s20_s13 = sadd.s32 1, %s1580_s13  }
 0x5c3   : > { %p17_p4 = scmp.ge.s32.totalorder %s20_s13, 4  }
 0x5c5   :  { %19 = sbr.rel (!%p17_p4) target bundleno = 1 (0x1), region = 90 }

</bundles_post_ra>
